<compile_context>
chip_gen: v7x
topology: tpu7x:2x2x1
jax: 0.10.0
libtpu: 0.0.40
codegen_flags: <defaults>
</compile_context>

<pallas_src>
import functools
import math

import jax
import jax.numpy as jnp
from jax.experimental import pallas as pl
from jax.experimental.pallas import tpu as pltpu


# -----------------------------------------------------------------------------
# Kernel 1: hoisted input projection   cur1 = data @ W1 + b1   (tiled over K)
# -----------------------------------------------------------------------------
def _input_proj_kernel(x_ref, w_ref, b_ref, out_ref, acc_ref):
    k = pl.program_id(0)

    @pl.when(k == 0)
    def _():
        acc_ref[...] = jnp.zeros_like(acc_ref)

    acc_ref[...] += jnp.dot(x_ref[...], w_ref[...],
                            preferred_element_type=jnp.float32)

    @pl.when(k == pl.num_programs(0) - 1)
    def _():
        out_ref[...] = acc_ref[...] + b_ref[...]


def input_projection(x, w, b, *, k_tile=512):
    """cur1 = x @ W1 + b1, K-tiled (computed once; data is constant over time).

    This kernel is HBM-bound on W1; at real scale keep k_tile <= 2048 on v7x
    (64 MiB VMEM, double-buffered streamed block) and 4096-8192 on v5e/v6e with
    a raised vmem_limit_bytes.  int8 W1 (v5e/v6e only) would halve the stream.
    """
    B, K = x.shape
    H = w.shape[1]
    k_tile = min(k_tile, K)
    assert K % k_tile == 0, "n_input must be a multiple of k_tile"
    x = x.astype(w.dtype)   # bf16 stream halves HBM traffic for the dominant input
    return pl.pallas_call(
        _input_proj_kernel,
        grid_spec=pltpu.PrefetchScalarGridSpec(
            num_scalar_prefetch=0,
            grid=(K // k_tile,),
            in_specs=[
                pl.BlockSpec((B, k_tile), lambda k: (0, k)),
                pl.BlockSpec((k_tile, H), lambda k: (k, 0)),
                pl.BlockSpec((1, H), lambda k: (0, 0)),
            ],
            out_specs=pl.BlockSpec((B, H), lambda k: (0, 0)),
            scratch_shapes=[pltpu.VMEM((B, H), jnp.float32)],
        ),
        out_shape=jax.ShapeDtypeStruct((B, H), jnp.float32),
        compiler_params=pltpu.CompilerParams(dimension_semantics=("arbitrary",)),
    )(x, w, b)


# -----------------------------------------------------------------------------
# Kernel 2: fused timestep pipeline, grid=(batch_groups, n_steps//t_inner)
# -----------------------------------------------------------------------------
def _fused_steps_kernel(cur1_ref, w2_ref, b2_ref, w3_ref, b3_ref,
                        wbig_ref, bbig_ref, wq_ref, bq_ref, wo_ref, bo_ref,
                        spk_rec_ref, mem_rec_ref,
                        mem1, mem2, mem3, spk_r, mem_r, mem_out,
                        q_sc, k_sc, v_sc, attn_sc,
                        *, beta, threshold, beta_r, threshold_r,
                        inv_scale, batch, t_inner, exp_dtype):
    H = mem1.shape[1]          # n_hidden == d_model
    R = spk_r.shape[1]         # n_hidden_RNN

    # Reset all state at the first time-chunk of each batch group.
    @pl.when(pl.program_id(1) == 0)
    def _init():
        mem1[...] = jnp.zeros_like(mem1)
        mem2[...] = jnp.zeros_like(mem2)
        mem3[...] = jnp.zeros_like(mem3)
        spk_r[...] = jnp.zeros_like(spk_r)
        mem_r[...] = jnp.zeros_like(mem_r)
        mem_out[...] = jnp.zeros_like(mem_out)

    ones_row = jnp.ones((1, H), exp_dtype)   # hoisted out of both loops

    def lif(cur, mem_prev):
        m = beta * mem_prev + cur
        s = jnp.where(m > threshold, 1.0, 0.0).astype(jnp.float32)
        return s, m - s * threshold

    def linear(x, w_ref, b_ref):
        # bf16 operands (spikes are exactly 0/1 -> lossless), f32 accumulation.
        return jnp.dot(x.astype(w_ref.dtype), w_ref[...],
                       preferred_element_type=jnp.float32) + b_ref[...]

    @pl.loop(0, t_inner)
    def _step(ti):
        # ---- Sequential: (hoisted Linear)+Leaky, Linear+Leaky, Dropout(id), Linear+Leaky
        spk1, m1 = lif(cur1_ref[...], mem1[...])       # layer-1 current precomputed
        mem1[...] = m1
        spk2, m2 = lif(linear(spk1, w2_ref, b2_ref), mem2[...])
        mem2[...] = m2
        # nn.Dropout(0.2): identity in eval mode
        spk3, m3 = lif(linear(spk2, w3_ref, b3_ref), mem3[...])
        mem3[...] = m3

        # ---- Fused [fcR + RLeaky recurrence | k_proj | v_proj]: ONE matmul
        #      over [spk3 | spk_r_prev] against the block matrix
        #      [[WfcR, Wk, Wv], [Vw, 0, 0]] built once in the wrapper.
        x_big = jnp.concatenate([spk3, spk_r[...]], axis=1).astype(wbig_ref.dtype)
        y = jnp.dot(x_big, wbig_ref[...],
                    preferred_element_type=jnp.float32) + bbig_ref[...]
        cur_r = y[:, :R]
        k_sc[...] = y[:, R:R + H]
        v_sc[...] = y[:, R + H:]

        # ---- RLeaky (beta=0.95, threshold=1.0, learned all-to-all recurrence)
        m_r = beta_r * mem_r[...] + cur_r
        s_r = jnp.where(m_r > threshold_r, 1.0, 0.0).astype(jnp.float32)
        spk_r[...] = s_r
        mem_r[...] = m_r - s_r * threshold_r

        # q projection, 1/sqrt(d) folded into q (d ops, not d*d)
        q_sc[...] = linear(s_r, wq_ref, bq_ref) * inv_scale

        # ---- SpikingMultiHeadAttention (num_heads=1, seq len 1 -> d_model is the key axis)
        # Dynamic loop (NOT a Python unroll) bounds the live range of the (d,d)
        # temporaries to one batch item -> no vreg spilling.
        @pl.loop(0, batch)
        def _attn(b):
            qb = q_sc[pl.ds(b, 1), :]        # (1, d)
            kb = k_sc[pl.ds(b, 1), :]        # (1, d)
            vb = v_sc[pl.ds(b, 1), :]        # (1, d)
            # Rank-1 scores: exact per-row softmax max from kmax/kmin
            # (two (1,d) lane reductions instead of a (d,d) XLU row-reduce).
            kmax = jnp.max(kb, axis=1, keepdims=True)
            kmin = jnp.min(kb, axis=1, keepdims=True)
            m_row = jnp.maximum(qb * kmax, qb * kmin)                 # (1, d_q)
            # scores^T[j, i] = k_j * q_i   (K=1 MXU outer product)
            # TODO(synk): could become a VPU broadcast multiply if one operand
            # were relaid out as a (d,1) column; kept on the MXU to avoid a
            # per-item lane->sublane transpose.
            scoresT = jax.lax.dot_general(
                kb, qb, dimension_numbers=(((0,), (0,)), ((), ())),
                preferred_element_type=jnp.float32)                   # (d_k, d_q)
            # bf16 exp / e-matrix (deferred normalization absorbs the scale);
            # pass exp_dtype=f32 on v5e (no bf16 EUP/VPU there).
            eT = jnp.exp((scoresT - m_row).astype(exp_dtype))
            vo = jnp.concatenate([vb.astype(exp_dtype), ones_row], axis=0)  # (2, d_k)
            # ONE matmul: row 0 = un-normalized attn output, row 1 = softmax denom.
            rd = jnp.dot(vo, eT, preferred_element_type=jnp.float32)        # (2, d_q)
            attn_sc[pl.ds(b, 1), :] = rd[0:1, :] * pl.reciprocal(rd[1:2, :],
                                                                 approx=True)

        # Dense Wo projection over the whole batch group (M = batch on the MXU).
        out = linear(attn_sc[...], wo_ref, bo_ref)

        # ---- Leaky_out (output=True) fused epilogue
        spk_o, m_o = lif(out, mem_out[...])
        mem_out[...] = m_o
        # Note: outputs kept f32 (bf16 writeback of spikes would be lossless but a
        # dynamic leading-index store into packed-sublane bf16 blocks is riskier,
        # and the writeback traffic here is negligible).
        spk_rec_ref[ti] = spk_o
        mem_rec_ref[ti] = m_o             # post-reset membrane recorded


# -----------------------------------------------------------------------------
# Parameter init (deterministic, PyTorch-Linear-style uniform(-1/sqrt(fan_in)))
# -----------------------------------------------------------------------------
def _init_linear(key, fan_in, fan_out, w_dtype=jnp.bfloat16):
    kw, kb = jax.random.split(key)
    bound = 1.0 / math.sqrt(fan_in)
    w = jax.random.uniform(kw, (fan_in, fan_out), jnp.float32, -bound, bound)
    b = jax.random.uniform(kb, (1, fan_out), jnp.float32, -bound, bound)
    return w.astype(w_dtype), b           # bf16 weights, f32 biases


def init_params(key, n_input, n_hidden, n_hidden_rnn):
    d_model = n_hidden
    keys = jax.random.split(key, 9)
    p = {}
    p["W1"], p["b1"] = _init_linear(keys[0], n_input, n_hidden)
    p["W2"], p["b2"] = _init_linear(keys[1], n_hidden, n_hidden)
    p["W3"], p["b3"] = _init_linear(keys[2], n_hidden, n_hidden)
    p["WfcR"], p["bfcR"] = _init_linear(keys[3], n_hidden, n_hidden_rnn)
    p["Vw"], p["Vb"] = _init_linear(keys[4], n_hidden_rnn, n_hidden_rnn)  # RLeaky recurrence
    p["Wq"], p["bq"] = _init_linear(keys[5], n_hidden_rnn, d_model)
    p["Wk"], p["bk"] = _init_linear(keys[6], d_model, d_model)
    p["Wv"], p["bv"] = _init_linear(keys[7], d_model, d_model)
    # cross_last=False (RSNN_VIT_Base_2 default) -> output_proj: Linear(d_model, d_model)
    p["Wo"], p["bo"] = _init_linear(keys[8], d_model, d_model)
    return p


# -----------------------------------------------------------------------------
# Forward: one hoisted projection + one fused pallas_call over all n_steps
# -----------------------------------------------------------------------------
def rsnn_vit_forward(params, data, *, n_steps, beta, threshold,
                     k_tile=512, t_inner=1, b_groups=1,
                     attn_exp_dtype=jnp.bfloat16):
    B = data.shape[0]
    H = params["W1"].shape[1]
    R = params["WfcR"].shape[1]
    d_model = H
    assert n_steps % t_inner == 0, "n_steps must be a multiple of t_inner"
    assert B % b_groups == 0, "batch must be a multiple of b_groups"
    bg = B // b_groups
    assert bg % 8 == 0, "per-group batch must be a multiple of 8 (sublane tile)"
    inv_scale = 1.0 / math.sqrt(d_model)   # head_dim == d_model (num_heads = 1)

    # data is constant across timesteps -> compute layer-1 current once.
    cur1 = input_projection(data, params["W1"], params["b1"], k_tile=k_tile)

    # Fuse the matmuls that share an input: [spk3 | spk_r] @ [[WfcR, Wk, Wv],[Vw, 0, 0]].
    # (Could be precomputed once at init; negligible vs the W1 stream.)
    wdt = params["Wk"].dtype
    w_top = jnp.concatenate([params["WfcR"], params["Wk"], params["Wv"]], axis=1)
    w_bot = jnp.concatenate([params["Vw"],
                             jnp.zeros((R, 2 * d_model), wdt)], axis=1)
    w_big = jnp.concatenate([w_top, w_bot], axis=0)                  # (H+R, R+2H)
    b_big = jnp.concatenate([params["bfcR"] + params["Vb"],
                             params["bk"], params["bv"]], axis=1)    # (1, R+2H)

    kern = functools.partial(
        _fused_steps_kernel, beta=beta, threshold=threshold,
        beta_r=0.95, threshold_r=1.0, inv_scale=inv_scale,
        batch=bg, t_inner=t_inner, exp_dtype=attn_exp_dtype)

    weight_args = (params["W2"], params["b2"], params["W3"], params["b3"],
                   w_big, b_big, params["Wq"], params["bq"],
                   params["Wo"], params["bo"])

    # Whole-array VMEM operands: weights stay resident across all grid steps.
    # At real scale on v7x (64 MiB VMEM) also raise vmem_limit_bytes / force
    # single-buffering; at these sizes (~1 MiB of weights) the defaults have slack.
    resident = [pl.BlockSpec(memory_space=pltpu.MemorySpace.VMEM)
                for _ in weight_args]

    n_chunks = n_steps // t_inner
    spk_rec, mem_rec = pl.pallas_call(
        kern,
        grid_spec=pltpu.PrefetchScalarGridSpec(
            num_scalar_prefetch=0,
            grid=(b_groups, n_chunks),
            in_specs=[pl.BlockSpec((bg, d_model), lambda g, tc: (g, 0))] + resident,
            out_specs=(
                pl.BlockSpec((t_inner, bg, d_model), lambda g, tc: (tc, g, 0)),
                pl.BlockSpec((t_inner, bg, d_model), lambda g, tc: (tc, g, 0)),
            ),
            scratch_shapes=[
                pltpu.VMEM((bg, H), jnp.float32),        # mem1
                pltpu.VMEM((bg, H), jnp.float32),        # mem2
                pltpu.VMEM((bg, H), jnp.float32),        # mem3
                pltpu.VMEM((bg, R), jnp.float32),        # spk_r (RLeaky spike state)
                pltpu.VMEM((bg, R), jnp.float32),        # mem_r
                pltpu.VMEM((bg, d_model), jnp.float32),  # mem_out
                pltpu.VMEM((bg, d_model), jnp.float32),  # q scratch
                pltpu.VMEM((bg, d_model), jnp.float32),  # k scratch
                pltpu.VMEM((bg, d_model), jnp.float32),  # v scratch
                pltpu.VMEM((bg, d_model), jnp.float32),  # attn rows scratch
            ],
        ),
        out_shape=(jax.ShapeDtypeStruct((n_steps, B, d_model), jnp.float32),
                   jax.ShapeDtypeStruct((n_steps, B, d_model), jnp.float32)),
        compiler_params=pltpu.CompilerParams(
            # batch groups are independent -> "parallel" (both v7x TensorCores);
            # the time recurrence is sequential -> "arbitrary".
            dimension_semantics=("parallel", "arbitrary")),
    )(cur1, *weight_args)
    return spk_rec, mem_rec


# -----------------------------------------------------------------------------
if __name__ == "__main__":
    # Small, lane-aligned shapes consistent with the module
    # (real model: n_input=224*224, n_hidden=1000 -> pad 1024, n_hidden_RNN=100 -> 128).
    batch = 16          # 2 batch groups of 8 (exercises the "parallel" grid axis)
    n_input = 1024
    n_hidden = 256
    n_hidden_rnn = 128
    n_steps = 4
    beta = 0.8
    threshold = 0.5

    key = jax.random.PRNGKey(0)
    k_param, k_data = jax.random.split(key)
    params = init_params(k_param, n_input, n_hidden, n_hidden_rnn)
    x = jax.random.uniform(k_data, (batch, n_input), jnp.float32)

    spk_out, mem_out = rsnn_vit_forward(
        params, x, n_steps=n_steps, beta=beta, threshold=threshold,
        k_tile=512, t_inner=2, b_groups=2,
        attn_exp_dtype=jnp.bfloat16)   # use jnp.float32 on v5e
    jax.block_until_ready((spk_out, mem_out))
    assert spk_out.shape == (n_steps, batch, n_hidden)
    assert mem_out.shape == (n_steps, batch, n_hidden)
    print("KERNEL_OK")
</pallas_src>

<mosaic_0001>
module attributes {stable_mosaic.version = 11 : i64} {
  func.func @_input_proj_kernel(%arg0: i32, %arg1: memref<16x512xbf16, #tpu.memory_space<vmem>>, %arg2: memref<512x256xbf16, #tpu.memory_space<vmem>>, %arg3: memref<1x256xf32, #tpu.memory_space<vmem>>, %arg4: memref<16x256xf32, #tpu.memory_space<vmem>>, %arg5: memref<16x256xf32, #tpu.memory_space<vmem>>) attributes {dimension_semantics = [#tpu.dimension_semantics<arbitrary>], iteration_bounds = array<i64: 2>, scalar_prefetch = 0 : i64, scratch_operands = 1 : i64, tpu.core_type = #tpu.core_type<tc>, window_params = [{transform_indices = @transform_0, window_bounds = array<i64: 16, 512>}, {transform_indices = @transform_1, window_bounds = array<i64: 512, 256>}, {pipeline_mode = #tpu.pipeline_mode<synchronous>, transform_indices = @transform_2, window_bounds = array<i64: 1, 256>}, {pipeline_mode = #tpu.pipeline_mode<synchronous>, transform_indices = @transform_3, window_bounds = array<i64: 16, 256>}]} {
    %c0_i32 = arith.constant 0 : i32
    %0 = arith.cmpi eq, %arg0, %c0_i32 : i32
    %1 = arith.extui %0 : i1 to i32
    %c0_i32_0 = arith.constant 0 : i32
    %2 = arith.cmpi ne, %1, %c0_i32_0 : i32
    scf.if %2 {
      %cst_9 = arith.constant 0.000000e+00 : f32
      %12 = vector.broadcast %cst_9 : f32 to vector<16x256xf32>
      %c0_10 = arith.constant 0 : index
      %c0_11 = arith.constant 0 : index
      %13 = vector.load %arg5[%c0_10, %c0_11] : memref<16x256xf32, #tpu.memory_space<vmem>>, vector<16x256xf32>
      tpu.vector_store %arg5[%c0_10, %c0_11], %12 {strides = array<i32>} : memref<16x256xf32, #tpu.memory_space<vmem>>, vector<16x256xf32>,
    } else {
    }
    %c0 = arith.constant 0 : index
    %c0_1 = arith.constant 0 : index
    %3 = vector.load %arg5[%c0, %c0_1] : memref<16x256xf32, #tpu.memory_space<vmem>>, vector<16x256xf32>
    %c0_2 = arith.constant 0 : index
    %c0_3 = arith.constant 0 : index
    %4 = vector.load %arg1[%c0_2, %c0_3] : memref<16x512xbf16, #tpu.memory_space<vmem>>, vector<16x512xbf16>
    %c0_4 = arith.constant 0 : index
    %c0_5 = arith.constant 0 : index
    %5 = vector.load %arg2[%c0_4, %c0_5] : memref<512x256xbf16, #tpu.memory_space<vmem>>, vector<512x256xbf16>
    %cst = arith.constant dense<0.000000e+00> : vector<16x256xf32>
    %6 = tpu.matmul %4, %5, %cst {dimension_numbers = #tpu.dot_dimension_numbers<[1], [0], [0], [1], [0, 0, 1, 1], [], []>} : vector<16x512xbf16>, vector<512x256xbf16>, vector<16x256xf32> -> vector<16x256xf32>
    %7 = arith.addf %3, %6 : vector<16x256xf32>
    %c0_6 = arith.constant 0 : index
    %c0_7 = arith.constant 0 : index
    %8 = vector.load %arg5[%c0_6, %c0_7] : memref<16x256xf32, #tpu.memory_space<vmem>>, vector<16x256xf32>
    tpu.vector_store %arg5[%c0_6, %c0_7], %7 {strides = array<i32>} : memref<16x256xf32, #tpu.memory_space<vmem>>, vector<16x256xf32>,
    %c1_i32 = arith.constant 1 : i32
    %9 = arith.cmpi eq, %arg0, %c1_i32 : i32
    %10 = arith.extui %9 : i1 to i32
    %c0_i32_8 = arith.constant 0 : i32
    %11 = arith.cmpi ne, %10, %c0_i32_8 : i32
    scf.if %11 {
      %c0_9 = arith.constant 0 : index
      %c0_10 = arith.constant 0 : index
      %12 = vector.load %arg5[%c0_9, %c0_10] : memref<16x256xf32, #tpu.memory_space<vmem>>, vector<16x256xf32>
      %c0_11 = arith.constant 0 : index
      %c0_12 = arith.constant 0 : index
      %13 = vector.load %arg3[%c0_11, %c0_12] : memref<1x256xf32, #tpu.memory_space<vmem>>, vector<1x256xf32>
      %14 = vector.broadcast %13 : vector<1x256xf32> to vector<16x256xf32>
      %15 = arith.addf %12, %14 : vector<16x256xf32>
      %c0_13 = arith.constant 0 : index
      %c0_14 = arith.constant 0 : index
      %16 = vector.load %arg4[%c0_13, %c0_14] : memref<16x256xf32, #tpu.memory_space<vmem>>, vector<16x256xf32>
      tpu.vector_store %arg4[%c0_13, %c0_14], %15 {strides = array<i32>} : memref<16x256xf32, #tpu.memory_space<vmem>>, vector<16x256xf32>,
    } else {
    }
    return
  }
  func.func @transform_0(%arg0: i32) -> (i32, i32) {
    %c0_i32 = arith.constant 0 : i32
    %c0_i32_0 = arith.constant 0 : i32
    return %c0_i32, %arg0 : i32, i32
  }
  func.func @transform_1(%arg0: i32) -> (i32, i32) {
    %c0_i32 = arith.constant 0 : i32
    %c0_i32_0 = arith.constant 0 : i32
    return %arg0, %c0_i32 : i32, i32
  }
  func.func @transform_2(%arg0: i32) -> (i32, i32) {
    %c0_i32 = arith.constant 0 : i32
    %c0_i32_0 = arith.constant 0 : i32
    %c0_i32_1 = arith.constant 0 : i32
    return %c0_i32, %c0_i32_0 : i32, i32
  }
  func.func @transform_3(%arg0: i32) -> (i32, i32) {
    %c0_i32 = arith.constant 0 : i32
    %c0_i32_0 = arith.constant 0 : i32
    %c0_i32_1 = arith.constant 0 : i32
    return %c0_i32, %c0_i32_0 : i32, i32
  }
}

</mosaic_0001>

<bundles_post_ra>
// kernel: tpu_custom_call.1
= control target key start
LH: loop header
LB: loop body
LE: loop exit
PB: predicated region body
PF: predicated region fallthrough
CT: control target
= control target key end

     0   :  { %8 = vsyncpa [#allocation4], 0  ;;  %s1509_s0 = inlined_call_operand.hbm [shape: bf16[16,1024], index: 0, kind: input, shape index: {}]   ;;  %s1510_s1 = inlined_call_operand.hbm [shape: bf16[1024,256], index: 1, kind: input, shape index: {}]   ;;  %s1511_s2 = inlined_call_operand.vmem [shape: f32[1,256], index: 2, kind: input, shape index: {}]   ;;  %s1512_s3 = inlined_call_operand.hbm [shape: f32[16,256], index: 3, kind: output, shape index: {}]  }
   0x1   :  { %10 = vsyncpa [#allocation4 + $0x1], 0 }
   0x2   :  { %11 = vsyncpa [#allocation7], 0 }
   0x3   :  { %13 = vsyncpa [#allocation7 + $0x1], 0 }
   0x4   :  { %14 = vsyncpa [#allocation5], 0  ;;  %s1260_s12 = smov 0   ;;  %s1262_s13 = smov 0  }
   0x5   :  { %s1264_s14 = smov 0   ;;  %s1266_s15 = smov 0  }
   0x6 LB: > { %s1279_s16 = sadd.s32 4294967295, %s1227_s15   ;;  %s1282_s17 = sadd.s32 1, %s1227_s15   ;;  %s1227_s15 = sphi %s1266_s15, %s1521_s15   ;;  %s1223_s14 = sphi %s1264_s14, %s1520_s14   ;;  %s1219_s13 = sphi %s1262_s13, %s1519_s13   ;;  %s1215_s12 = sphi %s1260_s12, %s1518_s12  }
   0x7   : > { %s24_s18 = ssub.s32 %s1227_s15, %s1282_s17  ;;  %s27_s19 = sadd.s32 1, %s1223_s14 }
   0x8   : > { %p25_p0 = scmp.eq.s32.totalorder %s24_s18, 0  ;;  %p34_p1 = scmp.ne.s32.totalorder %s1223_s14, %s1219_s13 }
   0x9   : > { %p35_p2 = scmp.eq.s32.totalorder %s1227_s15, 0  ;;  %p40_p3 = scmp.ne.s32.totalorder %s1219_s13, %s1215_s12 }
   0xa   : > { %s1292_s20 = scalar_select %p25_p0, %s1223_s14, %s27_s19  }
   0xb   : > { %p36_p4 = por %p35_p2, %p34_p1  ;;  %p41_p5 = scmp.eq.s32.totalorder %s1279_s16, 0 }
   0xc   : > { %p953_p6 = scmp.lt.s32.totalorder %s1227_s15, 2  ;;  %s1301_s22 = sand.u32 1, %s1223_s14  }
   0xd   : > { %p1296_p7 = por %p41_p5, %p40_p3  ;;  %s847_s23 = sshll.u32 %s1301_s22, 5 }
   0xe   : > { %s931_s24 = sshll.u32 %s1227_s15, 8  ;;  %s139_s28 = scalar_lea.vmem [#allocation3], %s847_s23 }
   0xf   : > { %s1514_s21 = scalar_select %p1296_p7, 1, 0 }
  0x10   : > { %s1308_s27 = scalar_lea.hbm %s1509_s0, %s931_s24  ;;  %s146_s29 = sshll.u32 %s139_s28, 4  ;;  %s1310_s29 = int_to_ptr.vmem [resolvable:$true] %s146_s29 }
  0x11   : > { %p1312_p8 = pnand %p953_p6, %p36_p4  ;;  %s136_s4 = scalar_lea.sflag [#allocation4], %s1301_s22 }
  0x12   : > { %s1099_s5 = scalar_lea.hbm %s1308_s27, 512  ;;  %s1104_s8 = scalar_lea.hbm %s1509_s0, 1024 }
  0x13   : > { %p1100_p9 = scmp.ne.s32.totalorder %s1308_s27, %s1099_s5  ;;  %p1101_p10 = pneg %p1312_p8 }
  0x14   : > { %p1105_p13 = scmp.lt.u32.totalorder %s1308_s27, %s1509_s0  ;;  %p1106_p0 = scmp.lt.u32.totalorder %s1104_s8, %s1099_s5 }
  0x15   : > { %p1102_p11 = pnand %p1101_p10, %p1100_p9  ;;  %p1108_p2 = scmp.lt.u32.totalorder %s1099_s5, %s1308_s27 }
  0x16   : > { %p1107_p1 = por %p1106_p0, %p1105_p13 }
  0x17   : > { %p1103_p12 = pneg %p1102_p11 }
  0x18   : > { %p1109_p3 = por %p1108_p2, %p1107_p1 }
  0x1a   : > { %p1110_p4 = pnand %p1109_p3, %p1103_p12 }
  0x1c   : > { %1113 = shalt.err (!%p1110_p4)
}
  0x1d   : > { %s1114_s11 = scalar_lea.vmem %s1310_s29, 512  ;;  %s1229_s12 = smov [#allocation3]  }
  0x1e   : > { %p1115_p5 = scmp.ne.s32.totalorder %s1310_s29, %s1114_s11  ;;  %s1119_s18 = sshll.u32 %s1229_s12, 4  ;;  %s1120_s18 = int_to_ptr.vmem [resolvable:$false] %s1119_s18 }
  0x1f   : > { %s1121_s19 = scalar_lea.vmem %s1120_s18, 1024  ;;  %p1122_p11 = scmp.lt.s32.totalorder %s1310_s29, %s1120_s18 }
  0x20   : > { %p1117_p6 = pnand %p1115_p5, %p1101_p10  ;;  %p1123_p13 = scmp.lt.s32.totalorder %s1121_s19, %s1114_s11 }
  0x22   : > { %p1118_p9 = pneg %p1117_p6  ;;  %p1124_p0 = por %p1123_p13, %p1122_p11 }
  0x24   : > { %p1125_p1 = pnand %p1124_p0, %p1118_p9 }
  0x26   : > { %1128 = shalt.err (!%p1125_p1)
}
  0x27   : > { %s1230_s23 = smov 512   ;;  %s1231_s24 = smov 256  }
  0x28   : > { %s1232_s25 = smov 16   ;;  %p854_p12 = scmp.ge.s32.totalorder %s1227_s15, 1 }
  0x29   : > { %949 = dma.hbm_to_vmem [thread:$0]  (!%p1312_p8), %s1308_s27, 512, %s1310_s29, %s136_s4, %s1230_s23, %s1231_s24, %s1232_s25  }
  0x2a   : > { %p176_p2 = scmp.lt.s32.totalorder %s1227_s15, 3  ;;  %s850_s26 = sshll.u32 %s1301_s22, 9 }
  0x2b   : > { %s933_s5 = sshll.u32 %s1227_s15, 13  ;;  %s160_s6 = scalar_lea.vmem [#allocation6], %s850_s26 }
  0x2c   : > { %p1347_p3 = pnand %p854_p12, %p176_p2  ;;  %s168_s7 = sshll.u32 %s160_s6, 4  ;;  %s1357_s7 = int_to_ptr.vmem [resolvable:$true] %s168_s7 }
  0x2d   : > { %s1355_s10 = scalar_lea.hbm %s1510_s1, %s933_s5  ;;  %s157_s27 = scalar_lea.sflag [#allocation7], %s1301_s22 }
  0x2e   : > { %s1129_s29 = scalar_lea.hbm %s1355_s10, 8192  ;;  %s1134_s11 = scalar_lea.hbm %s1510_s1, 16384 }
  0x2f   : > { %p1130_p4 = scmp.ne.s32.totalorder %s1355_s10, %s1129_s29  ;;  %p1135_p9 = scmp.lt.u32.totalorder %s1355_s10, %s1510_s1 }
  0x30   : > { %p1136_p11 = scmp.lt.u32.totalorder %s1134_s11, %s1129_s29  ;;  %p1138_p0 = scmp.lt.u32.totalorder %s1129_s29, %s1355_s10 }
  0x31   : > { %p1132_p5 = pnand %p1130_p4, %p1101_p10 }
  0x32   : > { %p1137_p13 = por %p1136_p11, %p1135_p9 }
  0x33   : > { %p1133_p6 = pneg %p1132_p5 }
  0x34   : > { %p1139_p1 = por %p1138_p0, %p1137_p13 }
  0x36   : > { %p1140_p12 = pnand %p1139_p1, %p1133_p6 }
  0x38   : > { %1143 = shalt.err (!%p1140_p12)
}
  0x39   : > { %s1144_s19 = scalar_lea.vmem %s1357_s7, 8192  ;;  %s1233_s23 = smov [#allocation6]  }
  0x3a   : > { %p1145_p2 = scmp.ne.s32.totalorder %s1357_s7, %s1144_s19  ;;  %s1149_s24 = sshll.u32 %s1233_s23, 4  ;;  %s1150_s24 = int_to_ptr.vmem [resolvable:$false] %s1149_s24 }
  0x3b   : > { %s1151_s25 = scalar_lea.vmem %s1150_s24, 16384  ;;  %p1152_p7 = scmp.lt.s32.totalorder %s1357_s7, %s1150_s24 }
  0x3c   : > { %p1147_p4 = pnand %p1145_p2, %p1101_p10  ;;  %p1153_p9 = scmp.lt.s32.totalorder %s1151_s25, %s1144_s19 }
  0x3e   : > { %p1148_p5 = pneg %p1147_p4  ;;  %p1154_p11 = por %p1153_p9, %p1152_p7 }
  0x40   : > { %p1155_p13 = pnand %p1154_p11, %p1148_p5 }
  0x42   : > { %1158 = shalt.err (!%p1155_p13)
}
  0x43   : > { %s1234_s26 = smov 128   ;;  %s1235_s5 = smov 8  }
  0x44   : > { %952 = dma.hbm_to_vmem [thread:$0]  (!%p1312_p8), %s1355_s10, 8192, %s1357_s7, %s157_s27, %s1234_s26, %s1234_s26, %s1235_s5  }
  0x45   : > { %180 = sbr.rel (%p1347_p3) target bundleno = 411 (0x19b), region = 32  ;;  %s182_s6 = sand.u32 (!%p1347_p3), 1, %s1219_s13  }
  0x46   : > { %s855_s8 = sshll.u32 (!%p1347_p3), %s182_s6, 5  ;;  %s183_s9 = scalar_lea.sflag (!%p1347_p3), [#allocation4], %s182_s6 }
  0x47   : > { %s1388_s29 = scalar_lea.vmem (!%p1347_p3), [#allocation3], %s855_s8  ;;  %p1517_p7 = scmp.ne.s32.totalorder (!%p1347_p3), %s1514_s21, 0 }
  0x4c   : > { %1202 = dma.done.wait (%p1517_p7), %s183_s9, 512  }
  0x4d   : > { %1204 = vsyncadd (%p1517_p7), %s183_s9, 4294966784  ;;  %s856_s15 = sshll.u32 %s182_s6, 9  ;;  %s192_s30 = scalar_lea.sflag [#allocation7], %s182_s6 }
  0x4e   : > { %s1394_s22 = scalar_lea.vmem [#allocation6], %s856_s15 }
  0x4f   : > { %1206 = dma.done.wait (%p1517_p7), %s192_s30, 8192  }
  0x50   : > { %1208 = vsyncadd (%p1517_p7), %s192_s30, 4294959104  ;;  %p857_p8 = scmp.ne.s32.totalorder %s1279_s16, 0 }
  0x51   : > { %v1236_v0 = vmov (!%p857_p8), 0.0  }
  0x52   : > { %223 = sbr.rel (%p857_p8) target bundleno = 89 (0x59), region = 44  ;;  %224 = vst [vmem:[#allocation2] sm:$0xff] (!%p857_p8), %v1236_v0  ;;  %225 = vst [vmem:[#allocation2 + $0x8] sm:$0xff] (!%p857_p8), %v1236_v0 }
  0x53   : > { %226 = vst [vmem:[#allocation2 + $0x10] sm:$0xff] (!%p857_p8), %v1236_v0  ;;  %227 = vst [vmem:[#allocation2 + $0x18] sm:$0xff] (!%p857_p8), %v1236_v0 }
  0x59 PF: > { %v997_v1 = vld [vmem:[%s1394_s22 + $0x4] ss:$8 sps:$4 sm:$0xff]   ;;  %v1001_v3 = vld [vmem:[%s1394_s22] ss:$8 sps:$4 sm:$0xff]   ;;  %v1003_v5 = vld [vmem:[%s1394_s22 + $0x14] ss:$8 sps:$4 sm:$0xff]  }
  0x5a   : > { %v999_v2 = vld [vmem:[%s1394_s22 + $0x104] ss:$8 sps:$4 sm:$0xff]   ;;  %640 = vmatprep.subr.bf16.mxu1 %v997_v1  ;;  %v1002_v4 = vld [vmem:[%s1394_s22 + $0x100] ss:$8 sps:$4 sm:$0xff]   ;;  %v1005_v6 = vld [vmem:[%s1394_s22 + $0x114] ss:$8 sps:$4 sm:$0xff]  }
  0x5b   : > { %683 = vmatprep.subr.bf16.mxu0 %v999_v2  ;;  %641 = vmatpush1.bf16.msra.mxu1 %v1001_v3  ;;  %v1007_v7 = vld [vmem:[%s1394_s22 + $0x10] ss:$8 sps:$4 sm:$0xff]   ;;  %v1009_v9 = vld [vmem:[%s1394_s22 + $0x24] ss:$8 sps:$4 sm:$0xff]   ;;  %v1013_v11 = vld [vmem:[%s1394_s22 + $0x20] ss:$8 sps:$4 sm:$0xff]  }
  0x5c   : > { %684 = vmatpush1.bf16.msra.mxu0 %v1002_v4  ;;  %642 = vmatprep.subr.bf16.mxu1 %v1003_v5  ;;  %v1008_v8 = vld [vmem:[%s1394_s22 + $0x110] ss:$8 sps:$4 sm:$0xff]   ;;  %v1011_v10 = vld [vmem:[%s1394_s22 + $0x124] ss:$8 sps:$4 sm:$0xff]   ;;  %v1014_v12 = vld [vmem:[%s1394_s22 + $0x120] ss:$8 sps:$4 sm:$0xff]  }
  0x5d   : > { %685 = vmatprep.subr.bf16.mxu0 %v1005_v6  ;;  %v1015_v13 = vld [vmem:[%s1394_s22 + $0x34] ss:$8 sps:$4 sm:$0xff]   ;;  %v1019_v15 = vld [vmem:[%s1394_s22 + $0x30] ss:$8 sps:$4 sm:$0xff]   ;;  %v1021_v17 = vld [vmem:[%s1394_s22 + $0x44] ss:$8 sps:$4 sm:$0xff]  }
  0x5e   : > { %v1017_v14 = vld [vmem:[%s1394_s22 + $0x134] ss:$8 sps:$4 sm:$0xff]   ;;  %v1020_v16 = vld [vmem:[%s1394_s22 + $0x130] ss:$8 sps:$4 sm:$0xff]   ;;  %v1023_v18 = vld [vmem:[%s1394_s22 + $0x144] ss:$8 sps:$4 sm:$0xff]  }
  0x5f   : > { %643 = vmatpush1.bf16.msra.mxu1 %v1007_v7  ;;  %v1025_v19 = vld [vmem:[%s1394_s22 + $0x40] ss:$8 sps:$4 sm:$0xff]   ;;  %v1027_v21 = vld [vmem:[%s1394_s22 + $0x54] ss:$8 sps:$4 sm:$0xff]   ;;  %v1031_v23 = vld [vmem:[%s1394_s22 + $0x50] ss:$8 sps:$4 sm:$0xff]  }
  0x60   : > { %686 = vmatpush1.bf16.msra.mxu0 %v1008_v8  ;;  %644 = vmatprep.subr.bf16.mxu1 %v1009_v9  ;;  %v1026_v20 = vld [vmem:[%s1394_s22 + $0x140] ss:$8 sps:$4 sm:$0xff]   ;;  %v1029_v22 = vld [vmem:[%s1394_s22 + $0x154] ss:$8 sps:$4 sm:$0xff]   ;;  %v1032_v24 = vld [vmem:[%s1394_s22 + $0x150] ss:$8 sps:$4 sm:$0xff]  }
  0x61   : > { %687 = vmatprep.subr.bf16.mxu0 %v1011_v10  ;;  %v1033_v25 = vld [vmem:[%s1394_s22 + $0x64] ss:$8 sps:$4 sm:$0xff]   ;;  %v1037_v27 = vld [vmem:[%s1394_s22 + $0x60] ss:$8 sps:$4 sm:$0xff]   ;;  %v1039_v29 = vld [vmem:[%s1394_s22 + $0x74] ss:$8 sps:$4 sm:$0xff]  }
  0x62   : > { %v1035_v26 = vld [vmem:[%s1394_s22 + $0x164] ss:$8 sps:$4 sm:$0xff]   ;;  %v1038_v28 = vld [vmem:[%s1394_s22 + $0x160] ss:$8 sps:$4 sm:$0xff]   ;;  %v1041_v30 = vld [vmem:[%s1394_s22 + $0x174] ss:$8 sps:$4 sm:$0xff]  }
  0x63   : > { %645 = vmatpush1.bf16.msra.mxu1 %v1013_v11  ;;  %v1043_v31 = vld [vmem:[%s1394_s22 + $0x70] ss:$8 sps:$4 sm:$0xff]   ;;  %v1045_v33 = vld [vmem:[%s1394_s22 + $0x84] ss:$8 sps:$4 sm:$0xff]   ;;  %v1049_v35 = vld [vmem:[%s1394_s22 + $0x80] ss:$8 sps:$4 sm:$0xff]  }
  0x64   : > { %688 = vmatpush1.bf16.msra.mxu0 %v1014_v12  ;;  %646 = vmatprep.subr.bf16.mxu1 %v1015_v13  ;;  %v1044_v32 = vld [vmem:[%s1394_s22 + $0x170] ss:$8 sps:$4 sm:$0xff]   ;;  %v1047_v34 = vld [vmem:[%s1394_s22 + $0x184] ss:$8 sps:$4 sm:$0xff]   ;;  %v1050_v36 = vld [vmem:[%s1394_s22 + $0x180] ss:$8 sps:$4 sm:$0xff]  }
  0x65   : > { %689 = vmatprep.subr.bf16.mxu0 %v1017_v14  ;;  %v1051_v37 = vld [vmem:[%s1394_s22 + $0x94] ss:$8 sps:$4 sm:$0xff]   ;;  %v1055_v39 = vld [vmem:[%s1394_s22 + $0x90] ss:$8 sps:$4 sm:$0xff]   ;;  %v1057_v41 = vld [vmem:[%s1394_s22 + $0xa4] ss:$8 sps:$4 sm:$0xff]  }
  0x66   : > { %v1053_v38 = vld [vmem:[%s1394_s22 + $0x194] ss:$8 sps:$4 sm:$0xff]   ;;  %v1056_v40 = vld [vmem:[%s1394_s22 + $0x190] ss:$8 sps:$4 sm:$0xff]   ;;  %v1059_v42 = vld [vmem:[%s1394_s22 + $0x1a4] ss:$8 sps:$4 sm:$0xff]  }
  0x67   : > { %647 = vmatpush1.bf16.msra.mxu1 %v1019_v15  ;;  %v1061_v43 = vld [vmem:[%s1394_s22 + $0xa0] ss:$8 sps:$4 sm:$0xff]   ;;  %v1063_v45 = vld [vmem:[%s1394_s22 + $0xb4] ss:$8 sps:$4 sm:$0xff]   ;;  %v1067_v47 = vld [vmem:[%s1394_s22 + $0xb0] ss:$8 sps:$4 sm:$0xff]  }
  0x68   : > { %690 = vmatpush1.bf16.msra.mxu0 %v1020_v16  ;;  %648 = vmatprep.subr.bf16.mxu1 %v1021_v17  ;;  %v1062_v44 = vld [vmem:[%s1394_s22 + $0x1a0] ss:$8 sps:$4 sm:$0xff]   ;;  %v1065_v46 = vld [vmem:[%s1394_s22 + $0x1b4] ss:$8 sps:$4 sm:$0xff]   ;;  %v1068_v49 = vld [vmem:[%s1394_s22 + $0x1b0] ss:$8 sps:$4 sm:$0xff]  }
  0x69   : > { %691 = vmatprep.subr.bf16.mxu0 %v1023_v18  ;;  %v1095_v48 = vld [vmem:[%s1388_s29 + $0x4] ss:$16 sps:$4 sm:$0xff]   ;;  %v1098_v52 = vld [vmem:[%s1388_s29 + $0xc] ss:$16 sps:$4 sm:$0xff]   ;;  %v1073_v53 = vld [vmem:[%s1394_s22 + $0xc0] ss:$8 sps:$4 sm:$0xff]  }
  0x6a   : > { %v1069_v50 = vld [vmem:[%s1394_s22 + $0xc4] ss:$8 sps:$4 sm:$0xff]   ;;  %672 = vmatprep.mubr.bf16.mxu1 %v1095_v48  ;;  %715 = vmatprep.mubr.bf16.mxu0 %v1098_v52  ;;  %v1074_v54 = vld [vmem:[%s1394_s22 + $0x1c0] ss:$8 sps:$4 sm:$0xff]   ;;  %v1075_v55 = vld [vmem:[%s1394_s22 + $0xd4] ss:$8 sps:$4 sm:$0xff]  }
  0x6b   : > { %649 = vmatpush1.bf16.msra.mxu1 %v1025_v19  ;;  %v1071_v51 = vld [vmem:[%s1394_s22 + $0x1c4] ss:$8 sps:$4 sm:$0xff]   ;;  %v1077_v56 = vld [vmem:[%s1394_s22 + $0x1d4] ss:$8 sps:$4 sm:$0xff]   ;;  %v1079_v57 = vld [vmem:[%s1394_s22 + $0xd0] ss:$8 sps:$4 sm:$0xff]  }
  0x6c   : > { %692 = vmatpush1.bf16.msra.mxu0 %v1026_v20  ;;  %650 = vmatprep.subr.bf16.mxu1 %v1027_v21  ;;  %v1080_v58 = vld [vmem:[%s1394_s22 + $0x1d0] ss:$8 sps:$4 sm:$0xff]   ;;  %v1081_v59 = vld [vmem:[%s1394_s22 + $0xe4] ss:$8 sps:$4 sm:$0xff]   ;;  %v1085_v61 = vld [vmem:[%s1394_s22 + $0xe0] ss:$8 sps:$4 sm:$0xff]  }
  0x6d   : > { %693 = vmatprep.subr.bf16.mxu0 %v1029_v22  ;;  %v1083_v60 = vld [vmem:[%s1394_s22 + $0x1e4] ss:$8 sps:$4 sm:$0xff]   ;;  %v1086_v62 = vld [vmem:[%s1394_s22 + $0x1e0] ss:$8 sps:$4 sm:$0xff]   ;;  %v1087_v63 = vld [vmem:[%s1394_s22 + $0xf4] ss:$8 sps:$4 sm:$0xff]  }
  0x6e   : > { %v1089_v0 = vld [vmem:[%s1394_s22 + $0x1f4] ss:$8 sps:$4 sm:$0xff]   ;;  %v1091_v1 = vld [vmem:[%s1394_s22 + $0xf0] ss:$8 sps:$4 sm:$0xff]   ;;  %v228_v6 = vld [vmem:[#allocation2] sm:$0xff]  ;;  %p926_p10 = scmp.ne.s32.totalorder %s1279_s16, 1 }
  0x6f   : > { %651 = vmatpush1.bf16.msra.mxu1 %v1031_v23  ;;  %v1092_v2 = vld [vmem:[%s1394_s22 + $0x1f0] ss:$8 sps:$4 sm:$0xff]   ;;  %v229_v10 = vld [vmem:[#allocation2 + $0x8] sm:$0xff] }
  0x70   : > { %694 = vmatpush1.bf16.msra.mxu0 %v1032_v24  ;;  %652 = vmatprep.subr.bf16.mxu1 %v1033_v25  ;;  %v1093_v3 = vld [vmem:[%s1388_s29] ss:$16 sps:$4 sm:$0xff]   ;;  %v1096_v4 = vld [vmem:[%s1388_s29 + $0x8] ss:$16 sps:$4 sm:$0xff]   ;;  %v744_v25 = vlaneseq (!%p926_p10) }
  0x71   : > { %695 = vmatprep.subr.bf16.mxu0 %v1035_v26  ;;  %v230_v14 = vld [vmem:[#allocation2 + $0x10] sm:$0xff]  ;;  %v231_v19 = vld [vmem:[#allocation2 + $0x18] sm:$0xff] }
  0x72   : > { %v745_v26 = vshrl.u32 (!%p926_p10), %v744_v25, 7 }
  0x73   : > { %653 = vmatpush1.bf16.msra.mxu1 %v1037_v27  ;;  %v742_v27 = vld [vmem:[%s1511_s2] sm:$0x3] (!%p926_p10) }
  0x74   : > { %696 = vmatpush1.bf16.msra.mxu0 %v1038_v28  ;;  %654 = vmatprep.subr.bf16.mxu1 %v1039_v29  ;;  %v746_v29 = vsub.s32 (!%p926_p10), 0, %v745_v26 }
  0x75   : > { %697 = vmatprep.subr.bf16.mxu0 %v1041_v30  ;;  %v750_v30 = vsub.s32 (!%p926_p10), 1, %v745_v26 }
  0x77   : > { %655 = vmatpush1.bf16.msra.mxu1 %v1043_v31 }
  0x78   : > { %698 = vmatpush1.bf16.msra.mxu0 %v1044_v32  ;;  %656 = vmatprep.subr.bf16.mxu1 %v1045_v33 }
  0x79   : > { %699 = vmatprep.subr.bf16.mxu0 %v1047_v34  ;;  %v747_v34 = vrot.slane (!%p926_p10), %v742_v27, %v746_v29 }
  0x7b   : > { %657 = vmatpush1.bf16.msra.mxu1 %v1049_v35  ;;  %v751_v35 = vrot.slane (!%p926_p10), %v742_v27, %v750_v30 }
  0x7c   : > { %700 = vmatpush1.bf16.msra.mxu0 %v1050_v36  ;;  %658 = vmatprep.subr.bf16.mxu1 %v1051_v37 }
  0x7d   : > { %701 = vmatprep.subr.bf16.mxu0 %v1053_v38 }
  0x7f   : > { %659 = vmatpush1.bf16.msra.mxu1 %v1055_v39 }
  0x80   : > { %702 = vmatpush1.bf16.msra.mxu0 %v1056_v40  ;;  %660 = vmatprep.subr.bf16.mxu1 %v1057_v41 }
  0x81   : > { %703 = vmatprep.subr.bf16.mxu0 %v1059_v42 }
  0x83   : > { %661 = vmatpush1.bf16.msra.mxu1 %v1061_v43 }
  0x84   : > { %704 = vmatpush1.bf16.msra.mxu0 %v1062_v44  ;;  %662 = vmatprep.subr.bf16.mxu1 %v1063_v45 }
  0x85   : > { %705 = vmatprep.subr.bf16.mxu0 %v1065_v46 }
  0x87   : > { %663 = vmatpush1.bf16.msra.mxu1 %v1067_v47 }
  0x88   : > { %706 = vmatpush1.bf16.msra.mxu0 %v1068_v49  ;;  %664 = vmatprep.subr.bf16.mxu1 %v1069_v50 }
  0x89   : > { %707 = vmatprep.subr.bf16.mxu0 %v1071_v51 }
  0x8b   : > { %665 = vmatpush1.bf16.msra.mxu1 %v1073_v53 }
  0x8c   : > { %708 = vmatpush1.bf16.msra.mxu0 %v1074_v54  ;;  %666 = vmatprep.subr.bf16.mxu1 %v1075_v55 }
  0x8d   : > { %709 = vmatprep.subr.bf16.mxu0 %v1077_v56 }
  0x8f   : > { %667 = vmatpush1.bf16.msra.mxu1 %v1079_v57 }
  0x90   : > { %710 = vmatpush1.bf16.msra.mxu0 %v1080_v58  ;;  %668 = vmatprep.subr.bf16.mxu1 %v1081_v59 }
  0x91   : > { %711 = vmatprep.subr.bf16.mxu0 %v1083_v60 }
  0x93   : > { %669 = vmatpush1.bf16.msra.mxu1 %v1085_v61 }
  0x94   : > { %712 = vmatpush1.bf16.msra.mxu0 %v1086_v62  ;;  %670 = vmatprep.subr.bf16.mxu1 %v1087_v63 }
  0x95   : > { %713 = vmatprep.subr.bf16.mxu0 %v1089_v0 }
  0x97   : > { %671 = vmatpush1.bf16.msra.mxu1 %v1091_v1 }
  0x98   : > { %714 = vmatpush1.bf16.msra.mxu0 %v1092_v2 }
  0x9a   : > { %673 = vmatmul.mubr.bf16.vlgmr.msra.gmra.mrb[0].mxu1 %v1093_v3 }
  0x9b   : > { %716 = vmatmul.mubr.bf16.vlgmr.msra.gmra.mrb[0].mxu0 %v1096_v4 }
 0x16d   : > { %v674_v5 = vpop.f32.mrb[0].mxu1 }
 0x16e   : > { %v717_v7 = vpop.f32.mrb[0].mxu0  ;;  %v676_v9 = vpop.f32.mrb[1].mxu1 }
 0x16f   : > { %v718_v8 = vadd.f32 %v717_v7, %v674_v5  ;;  %v719_v11 = vpop.f32.mrb[1].mxu0  ;;  %v678_v13 = vpop.f32.mrb[2].mxu1 }
 0x170   : > { %v720_v12 = vadd.f32 %v719_v11, %v676_v9  ;;  %v721_v15 = vpop.f32.mrb[2].mxu0  ;;  %v680_v18 = vpop.f32.mrb[3].mxu1  ;;  %737 = sbr.rel (%p926_p10) target bundleno = 385 (0x181), region = 48 }
 0x171   : > { %v726_v16 = vadd.f32 %v718_v8, %v228_v6  ;;  %v722_v17 = vadd.f32 %v721_v15, %v678_v13  ;;  %v723_v20 = vpop.f32.mrb[3].mxu0 }
 0x172   : > { %v727_v21 = vadd.f32 %v720_v12, %v229_v10  ;;  %v724_v22 = vadd.f32 %v723_v20, %v680_v18 }
 0x173   : > { %730 = vst [vmem:[#allocation2] sm:$0xff] %v726_v16  ;;  %v728_v23 = vadd.f32 %v722_v17, %v230_v14 }
 0x174   : > { %731 = vst [vmem:[#allocation2 + $0x8] sm:$0xff] %v727_v21  ;;  %v729_v24 = vadd.f32 %v724_v22, %v231_v19 }
 0x175   : > { %732 = vst [vmem:[#allocation2 + $0x10] sm:$0xff] %v728_v23 }
 0x176   : > { %733 = vst [vmem:[#allocation2 + $0x18] sm:$0xff] %v729_v24 }
 0x17a   : > { %v738_v28 = vld [vmem:[#allocation2] sm:$0xff] }
 0x17b   : > { %v739_v31 = vld [vmem:[#allocation2 + $0x8] sm:$0xff]  ;;  %v754_v36 = vadd.f32 %v747_v34, %v738_v28 }
 0x17c   : > { %v740_v32 = vld [vmem:[#allocation2 + $0x10] sm:$0xff]  ;;  %v755_v37 = vadd.f32 %v751_v35, %v739_v31 }
 0x17d   : > { %v741_v33 = vld [vmem:[#allocation2 + $0x18] sm:$0xff]  ;;  %v756_v38 = vadd.f32 %v747_v34, %v740_v32  ;;  %758 = vst [vmem:[#allocation8] sm:$0xff] %v754_v36 }
 0x17e   : > { %v757_v39 = vadd.f32 %v751_v35, %v741_v33  ;;  %759 = vst [vmem:[#allocation8 + $0x8] sm:$0xff] %v755_v37 }
 0x17f   : > { %760 = vst [vmem:[#allocation8 + $0x10] sm:$0xff] %v756_v38 }
 0x180   : > { %761 = vst [vmem:[#allocation8 + $0x18] sm:$0xff] %v757_v39 }
 0x181 PF: > { %p954_p3 = scmp.eq.s32.totalorder %s1279_s16, 1  ;;  %s1237_s7 = smov [#allocation8]  }
 0x182   : > { %s768_s10 = sshll.u32 %s1237_s7, 4  ;;  %s769_s10 = int_to_ptr.vmem [resolvable:$true] %s768_s10 }
 0x183   : > { %s1159_s27 = scalar_lea.vmem %s769_s10, 512  ;;  %p1166_p12 = scmp.lt.s32.totalorder %s769_s10, %s769_s10 }
 0x184   : > { %p1160_p6 = scmp.ne.s32.totalorder %s769_s10, %s1159_s27  ;;  %p1167_p2 = scmp.lt.s32.totalorder %s1159_s27, %s1159_s27 }
 0x186   : > { %p1161_p0 = pnand %p1160_p6, %p954_p3  ;;  %p1168_p4 = por %p1167_p2, %p1166_p12 }
 0x188   : > { %p1162_p1 = pneg %p1161_p0 }
 0x18a   : > { %p1169_p5 = pnand %p1168_p4, %p1162_p1 }
 0x18c   : > { %1172 = shalt.err (!%p1169_p5)
}
 0x18d   : > { %s1173_s12 = scalar_lea.hbm %s1512_s3, 512 }
 0x18e   : > { %p1174_p9 = scmp.ne.s32.totalorder %s1512_s3, %s1173_s12  ;;  %p1179_p7 = scmp.lt.u32.totalorder %s1173_s12, %s1512_s3 }
 0x190   : > { %p1175_p11 = pnand %p1174_p9, %p954_p3 }
 0x192   : > { %p1176_p13 = pneg %p1175_p11 }
 0x194   : > { %p1181_p8 = pnand %p1179_p7, %p1176_p13 }
 0x196   : > { %1184 = shalt.err (!%p1181_p8)
}
 0x197   : > { %s1238_s25 = smov 256   ;;  %s1239_s26 = smov 16  }
 0x198   : > { %943 = dma.vmem_to_hbm [thread:$0]  (%p954_p3), %s769_s10, 512, %s1512_s3, [#allocation5], %s1238_s25, %s1238_s25, %s1239_s26  }
 0x199   : > { %1210 = dma.done.wait (%p954_p3), [#allocation5], 512  }
 0x19a   : > { %1212 = vsyncadd (%p954_p3), [#allocation5], 4294966784 }
 0x19b PF: > { %p17_p10 = scmp.ge.s32.totalorder %s1282_s17, 4   ;;  %s1518_s12 = smov %s1219_s13 }
 0x19c   : > { %s1519_s13 = smov %s1223_s14  ;;  %s1520_s14 = smov %s1292_s20 }
 0x19d   : > { %s1521_s15 = smov %s1282_s17  ;;  %19 = sbr.rel (!%p17_p10) target bundleno = 6 (0x6), region = 90 }
 0x1a4   :  { %784 = vsyncpa [#allocation4], 1 }
 0x1a5   :  { %786 = vsyncpa [#allocation4 + $0x1], 1 }
 0x1a6   :  { %787 = vsyncpa [#allocation7], 1 }
 0x1a7   :  { %789 = vsyncpa [#allocation7 + $0x1], 1 }
 0x1a8   :  { %790 = vsyncpa [#allocation5], 1 }
 0x1a9   :  { %792 = vsyncpa [#allocation5 + $0x1], 1 }

</bundles_post_ra>
